<compile_context>
chip_gen: v5e
topology: v5e:2x2
jax: 0.10.0
libtpu: 0.0.40
codegen_flags: <defaults>
</compile_context>

<pallas_src>
import jax
import jax.numpy as jnp
from jax.experimental import pallas as pl
from jax.experimental.pallas import tpu as pltpu


def _round_up(n, m):
    return ((n + m - 1) // m) * m


def _program_kernel(params_ref, xt_ref, o_ref):
    # xt_ref: (4, Rb, 128) feature-major tile; each feature is a full (Rb, 128) slab.
    x0 = xt_ref[0]          # (Rb, 128)  feature 0
    x1 = xt_ref[1]          # (Rb, 128)  feature 1 == routing selector
    x2 = xt_ref[2]          # (Rb, 128)  feature 2

    def head(k):
        # 12 invariant scalars live in SMEM (scalar prefetch); broadcast on the VPU.
        w0 = params_ref[3 * k + 0]
        w1 = params_ref[3 * k + 1]
        w2 = params_ref[3 * k + 2]
        b = params_ref[9 + k]
        return x0 * w0 + x1 * w1 + x2 * w2 + b

    y_straight = head(0)
    y_up = head(1)
    y_down = head(2)

    zero = jnp.zeros_like(x1)
    out = jnp.where(x1 == 0.0, y_straight,
          jnp.where(x1 == 1.0, y_up,
          jnp.where(x1 == 2.0, y_down, zero)))
    o_ref[...] = out.astype(o_ref.dtype)


def program_forward_single_nn(x, w_stacked, b_stacked, *, tb=131072):
    """Pallas wrapper for Program.forward(input, version='single_nn_learning').

    x:          (B, 4) float32
    w_stacked:  (3, 3) float32, row k = weights of head k (straight, up, down)
    b_stacked:  (1, 3) float32, bias of each head
    tb:         target batch-lanes per grid step (rounded to 128-lane rows)
    returns:    (B, 1) float32
    """
    B, D = x.shape
    assert D == 4, "forward implies D-1 == 3 linear input features"

    # Pad batch only to a 128-lane multiple (needed for the (.., 128) reshape).
    B128 = _round_up(B, 128)
    r_total = B128 // 128               # rows of 128 lanes

    # Rows-per-block: multiple of 8 (or the full extent) per the (8,128) rule,
    # large enough to amortize per-step overhead, small enough to keep >=2 grid
    # steps for v7x megacore when the batch allows it.
    max_rb = max(8, tb // 128)
    if r_total < 16:
        rb = r_total                    # single block == full extent (always legal)
    else:
        rb = min(max_rb, _round_up(pl.cdiv(r_total, 2), 8))
        rb = max(8, (rb // 8) * 8)
    grid = pl.cdiv(r_total, rb)

    # Feature-major, sublane+lane-dense layout: one fused pad+transpose+reshape copy.
    xt = jnp.pad(x, ((0, B128 - B), (0, 0))).T.reshape(4, r_total, 128)

    # 12 invariant parameters -> flat scalar-prefetch operand (lands in SMEM).
    params = jnp.concatenate(
        [w_stacked.reshape(-1), b_stacked.reshape(-1)]).astype(jnp.float32)  # (12,)

    out2d = pl.pallas_call(
        _program_kernel,
        out_shape=jax.ShapeDtypeStruct((r_total, 128), jnp.float32),
        grid_spec=pltpu.PrefetchScalarGridSpec(
            num_scalar_prefetch=1,
            grid=(grid,),
            in_specs=[
                pl.BlockSpec((4, rb, 128), lambda i, params: (0, i, 0)),
            ],
            out_specs=pl.BlockSpec((rb, 128), lambda i, params: (i, 0)),
        ),
        compiler_params=pltpu.CompilerParams(
            dimension_semantics=("parallel",)),
    )(params, xt)

    # TODO(synk): if the consumer can accept a flat (B,) / lane-major result,
    # this trailing slice+reshape copy can be dropped.
    return out2d.reshape(-1)[:B].reshape(B, 1)


def _reference(x, w, b):
    feats = x[:, :3]
    sel = x[:, 1]
    y = feats @ w.T + b                                     # (B, 3)
    res = jnp.zeros((x.shape[0], 1), jnp.float32)
    res = jnp.where((sel == 0.0)[:, None], y[:, 0:1], res)
    res = jnp.where((sel == 1.0)[:, None], y[:, 1:2], res)
    res = jnp.where((sel == 2.0)[:, None], y[:, 2:3], res)
    return res


def _make_inputs(key, B, D=4):
    k_feat, _ = jax.random.split(key)
    x = jax.random.normal(k_feat, (B, D), dtype=jnp.float32)
    # Selector column (index 1) takes integer values in {0, 1, 2, 3}; 3 exercises
    # the "no head selected -> stays zero" path.
    selector = (jnp.arange(B) % 4).astype(jnp.float32)
    return x.at[:, 1].set(selector)


if __name__ == "__main__":
    # Deterministic parameter init for the three Linear(3 -> 1) heads
    # (nn_straight, nn_up, nn_down), stacked along axis 0.
    k_w, k_b = jax.random.split(jax.random.PRNGKey(42))
    w_stacked = 0.1 * jax.random.normal(k_w, (3, 3), dtype=jnp.float32)  # (head, in)
    b_stacked = 0.1 * jax.random.normal(k_b, (1, 3), dtype=jnp.float32)  # (1, head)

    # Small primary case (single block), plus a modest multi-block / ragged case.
    for case_idx, B in enumerate((16, 2100)):
        x = _make_inputs(jax.random.PRNGKey(case_idx), B)
        out = program_forward_single_nn(x, w_stacked, b_stacked)
        out = jax.block_until_ready(out)
        ref = _reference(x, w_stacked, b_stacked)
        assert out.shape == (B, 1)
        assert jnp.allclose(out, ref, rtol=1e-3, atol=1e-5), (B, out, ref)

    print("KERNEL_OK")
</pallas_src>

<mosaic_0001>
module attributes {stable_mosaic.version = 11 : i64} {
  func.func @_program_kernel(%arg0: i32, %arg1: memref<12xf32, #tpu.memory_space<smem>>, %arg2: memref<4x1x128xf32, #tpu.memory_space<vmem>>, %arg3: memref<1x128xf32, #tpu.memory_space<vmem>>) attributes {dimension_semantics = [#tpu.dimension_semantics<parallel>], iteration_bounds = array<i64: 1>, scalar_prefetch = 1 : i64, scratch_operands = 0 : i64, tpu.core_type = #tpu.core_type<tc>, window_params = [{transform_indices = @transform_0, window_bounds = array<i64: 4, 1, 128>}, {transform_indices = @transform_1, window_bounds = array<i64: 1, 128>}]} {
    %c0 = arith.constant 0 : index
    %c0_0 = arith.constant 0 : index
    %c0_1 = arith.constant 0 : index
    %0 = vector.load %arg2[%c0, %c0_0, %c0_1] : memref<4x1x128xf32, #tpu.memory_space<vmem>>, vector<1x1x128xf32>
    %1 = vector.shape_cast %0 : vector<1x1x128xf32> to vector<1x128xf32>
    %c1 = arith.constant 1 : index
    %c0_2 = arith.constant 0 : index
    %c0_3 = arith.constant 0 : index
    %2 = vector.load %arg2[%c1, %c0_2, %c0_3] : memref<4x1x128xf32, #tpu.memory_space<vmem>>, vector<1x1x128xf32>
    %3 = vector.shape_cast %2 : vector<1x1x128xf32> to vector<1x128xf32>
    %c2 = arith.constant 2 : index
    %c0_4 = arith.constant 0 : index
    %c0_5 = arith.constant 0 : index
    %4 = vector.load %arg2[%c2, %c0_4, %c0_5] : memref<4x1x128xf32, #tpu.memory_space<vmem>>, vector<1x1x128xf32>
    %5 = vector.shape_cast %4 : vector<1x1x128xf32> to vector<1x128xf32>
    %c0_6 = arith.constant 0 : index
    %6 = memref.load %arg1[%c0_6] : memref<12xf32, #tpu.memory_space<smem>>
    %c1_7 = arith.constant 1 : index
    %7 = memref.load %arg1[%c1_7] : memref<12xf32, #tpu.memory_space<smem>>
    %c2_8 = arith.constant 2 : index
    %8 = memref.load %arg1[%c2_8] : memref<12xf32, #tpu.memory_space<smem>>
    %c9 = arith.constant 9 : index
    %9 = memref.load %arg1[%c9] : memref<12xf32, #tpu.memory_space<smem>>
    %10 = vector.broadcast %6 : f32 to vector<1x128xf32>
    %11 = arith.mulf %1, %10 : vector<1x128xf32>
    %12 = vector.broadcast %7 : f32 to vector<1x128xf32>
    %13 = arith.mulf %3, %12 : vector<1x128xf32>
    %14 = arith.addf %11, %13 : vector<1x128xf32>
    %15 = vector.broadcast %8 : f32 to vector<1x128xf32>
    %16 = arith.mulf %5, %15 : vector<1x128xf32>
    %17 = arith.addf %14, %16 : vector<1x128xf32>
    %18 = vector.broadcast %9 : f32 to vector<1x128xf32>
    %19 = arith.addf %17, %18 : vector<1x128xf32>
    %c3 = arith.constant 3 : index
    %20 = memref.load %arg1[%c3] : memref<12xf32, #tpu.memory_space<smem>>
    %c4 = arith.constant 4 : index
    %21 = memref.load %arg1[%c4] : memref<12xf32, #tpu.memory_space<smem>>
    %c5 = arith.constant 5 : index
    %22 = memref.load %arg1[%c5] : memref<12xf32, #tpu.memory_space<smem>>
    %c10 = arith.constant 10 : index
    %23 = memref.load %arg1[%c10] : memref<12xf32, #tpu.memory_space<smem>>
    %24 = vector.broadcast %20 : f32 to vector<1x128xf32>
    %25 = arith.mulf %1, %24 : vector<1x128xf32>
    %26 = vector.broadcast %21 : f32 to vector<1x128xf32>
    %27 = arith.mulf %3, %26 : vector<1x128xf32>
    %28 = arith.addf %25, %27 : vector<1x128xf32>
    %29 = vector.broadcast %22 : f32 to vector<1x128xf32>
    %30 = arith.mulf %5, %29 : vector<1x128xf32>
    %31 = arith.addf %28, %30 : vector<1x128xf32>
    %32 = vector.broadcast %23 : f32 to vector<1x128xf32>
    %33 = arith.addf %31, %32 : vector<1x128xf32>
    %c6 = arith.constant 6 : index
    %34 = memref.load %arg1[%c6] : memref<12xf32, #tpu.memory_space<smem>>
    %c7 = arith.constant 7 : index
    %35 = memref.load %arg1[%c7] : memref<12xf32, #tpu.memory_space<smem>>
    %c8 = arith.constant 8 : index
    %36 = memref.load %arg1[%c8] : memref<12xf32, #tpu.memory_space<smem>>
    %c11 = arith.constant 11 : index
    %37 = memref.load %arg1[%c11] : memref<12xf32, #tpu.memory_space<smem>>
    %38 = vector.broadcast %34 : f32 to vector<1x128xf32>
    %39 = arith.mulf %1, %38 : vector<1x128xf32>
    %40 = vector.broadcast %35 : f32 to vector<1x128xf32>
    %41 = arith.mulf %3, %40 : vector<1x128xf32>
    %42 = arith.addf %39, %41 : vector<1x128xf32>
    %43 = vector.broadcast %36 : f32 to vector<1x128xf32>
    %44 = arith.mulf %5, %43 : vector<1x128xf32>
    %45 = arith.addf %42, %44 : vector<1x128xf32>
    %46 = vector.broadcast %37 : f32 to vector<1x128xf32>
    %47 = arith.addf %45, %46 : vector<1x128xf32>
    %cst = arith.constant 0.000000e+00 : f32
    %48 = vector.broadcast %cst : f32 to vector<1x128xf32>
    %cst_9 = arith.constant 0.000000e+00 : f32
    %49 = vector.broadcast %cst_9 : f32 to vector<1x128xf32>
    %50 = arith.cmpf oeq, %3, %49 : vector<1x128xf32>
    %cst_10 = arith.constant 1.000000e+00 : f32
    %51 = vector.broadcast %cst_10 : f32 to vector<1x128xf32>
    %52 = arith.cmpf oeq, %3, %51 : vector<1x128xf32>
    %cst_11 = arith.constant 2.000000e+00 : f32
    %53 = vector.broadcast %cst_11 : f32 to vector<1x128xf32>
    %54 = arith.cmpf oeq, %3, %53 : vector<1x128xf32>
    %55 = arith.select %54, %47, %48 : vector<1x128xi1>, vector<1x128xf32>
    %56 = arith.select %52, %33, %55 : vector<1x128xi1>, vector<1x128xf32>
    %57 = arith.select %50, %19, %56 : vector<1x128xi1>, vector<1x128xf32>
    %c0_12 = arith.constant 0 : index
    %c0_13 = arith.constant 0 : index
    %58 = vector.load %arg3[%c0_12, %c0_13] : memref<1x128xf32, #tpu.memory_space<vmem>>, vector<1x128xf32>
    tpu.vector_store %arg3[%c0_12, %c0_13], %57 {strides = array<i32>} : memref<1x128xf32, #tpu.memory_space<vmem>>, vector<1x128xf32>,
    return
  }
  func.func @transform_0(%arg0: i32, %arg1: memref<12xf32, #tpu.memory_space<smem>>) -> (i32, i32, i32) {
    %c0_i32 = arith.constant 0 : i32
    %c0_i32_0 = arith.constant 0 : i32
    %c0_i32_1 = arith.constant 0 : i32
    return %c0_i32, %arg0, %c0_i32_0 : i32, i32, i32
  }
  func.func @transform_1(%arg0: i32, %arg1: memref<12xf32, #tpu.memory_space<smem>>) -> (i32, i32) {
    %c0_i32 = arith.constant 0 : i32
    %c0_i32_0 = arith.constant 0 : i32
    return %arg0, %c0_i32 : i32, i32
  }
}

</mosaic_0001>

<bundles_post_ra>
// kernel: tpu_custom_call.1
= control target key start
LH: loop header
LB: loop body
LE: loop exit
PB: predicated region body
PF: predicated region fallthrough
CT: control target
= control target key end

     0   :  { %s187_s12 = smov [#allocation3]   ;;  %s222_s0 = inlined_call_operand.hbm [shape: f32[12], index: 0, kind: input, shape index: {}]   ;;  %s223_s1 = inlined_call_operand.hbm [shape: f32[4,1,128], index: 1, kind: input, shape index: {}]   ;;  %s224_s2 = inlined_call_operand.hbm [shape: f32[1,128], index: 2, kind: output, shape index: {}]  }
   0x1   :  { %s8_s11 = sshll.u32 %s222_s0, 4  ;;  %s9_s11 = int_to_ptr.hbm [resolvable:$true] %s8_s11 }
   0x2   :  { %11 = dma.hbm_to_smem %s9_s11, 16, %s187_s12, [#allocation2] }
   0x3   :  { %181 = dma.done.wait [#allocation2], 16 }
   0x4   :  { %182 = vsyncadd [#allocation2], 4294967280 }
   0x5   :  { %14 = sfence }
   0x6   :  { %15 = vsyncpa [#allocation5], 0 }
   0x7   :  { %16 = vsyncpa [#allocation6], 0  ;;  %s21_s15 = sshll.u32 %s223_s1, 4  ;;  %s188_s16 = smov [#allocation4]   ;;  %s22_s15 = int_to_ptr.hbm [resolvable:$true] %s21_s15 }
   0x8   :  { %s23_s17 = sshll.u32 %s188_s16, 4  ;;  %s189_s18 = smov 16   ;;  %s24_s17 = int_to_ptr.vmem [resolvable:$true] %s23_s17 }
   0x9   :  { %s190_s19 = smov 1  }
   0xa   :  { %29 = dma.hbm_to_vmem [thread:$0]  %s22_s15, 64, %s24_s17, [#allocation5], %s189_s18, %s189_s18, %s190_s19  }
   0xb   :  { %183 = dma.done.wait [#allocation5], 64  }
   0xc   :  { %184 = vsyncadd [#allocation5], 4294967232  ;;  %s39_s0 = sld [smem:[#allocation3]]  ;;  %v34_v0 = vld [vmem:[#allocation4] sm:$0x1]  ;;  %s191_s30 = smov [#allocation7]  }
   0xd   :  { %s105_s20 = sld [smem:[#allocation3 + $0x1]]  ;;  %v36_v3 = vld [vmem:[#allocation4 + $0x1] sm:$0x1]  ;;  %v38_v5 = vld [vmem:[#allocation4 + $0x2] sm:$0x1]  ;;  %s93_s3 = sshll.u32 %s191_s30, 4  ;;  %s94_s3 = int_to_ptr.vmem [resolvable:$true] %s93_s3 }
   0xe   :  { %s106_s21 = sld [smem:[#allocation3 + $0x2]]  ;;  %vm83_vm0 = vcmp.eq.f32.partialorder %v36_v3, 2.0  ;;  %vm82_vm1 = vcmp.eq.f32.partialorder %v36_v3, 1.0  ;;  %s95_s6 = sshll.u32 %s224_s2, 4  ;;  %vm81_vm2 = vcmp.eq.f32.partialorder %v36_v3, 0.0  ;;  %s96_s6 = int_to_ptr.hbm [resolvable:$true] %s95_s6 }
   0xf   :  { %s108_s22 = sld [smem:[#allocation3 + $0x3]] }
  0x10   :  { %s109_s23 = sld [smem:[#allocation3 + $0x4]] }
  0x11   :  { %s213_s24 = sld [smem:[#allocation3 + $0x9]] }
  0x12   :  { %s110_s25 = sld [smem:[#allocation3 + $0x5]]  ;;  %v43_v1 = vstv %s39_s0 }
  0x13   :  { %v45_v2 = vstv %s105_s20  ;;  %s215_s1 = sld [smem:[#allocation3 + $0xa]]  ;;  %v44_v6 = vmul.f32 %v43_v1, %v34_v0 }
  0x14   :  { %s112_s26 = sld [smem:[#allocation3 + $0x6]]  ;;  %v46_v7 = vmul.f32 %v45_v2, %v36_v3  ;;  %v48_v10 = vstv %s106_s21 }
  0x15   :  { %v57_v4 = vstv %s108_s22  ;;  %s113_s27 = sld [smem:[#allocation3 + $0x7]]  ;;  %v49_v16 = vmul.f32 %v48_v10, %v38_v5 }
  0x16   :  { %v58_v8 = vmul.f32 %v57_v4, %v34_v0  ;;  %v59_v9 = vstv %s109_s23  ;;  %s114_s28 = sld [smem:[#allocation3 + $0x8]]  ;;  %v47_v15 = vadd.f32 %v46_v7, %v44_v6 }
  0x17   :  { %v60_v11 = vmul.f32 %v59_v9, %v36_v3  ;;  %s115_s29 = sld [smem:[#allocation3 + $0xb]]  ;;  %v51_v27 = vstv %s213_s24 }
  0x18   :  { %v62_v12 = vstv %s110_s25  ;;  %v50_v24 = vadd.f32 %v49_v16, %v47_v15 }
  0x19   :  { %v61_v13 = vadd.f32 %v60_v11, %v58_v8  ;;  %v63_v14 = vmul.f32 %v62_v12, %v38_v5  ;;  %v65_v25 = vstv %s215_s1 }
  0x1a   :  { %v71_v17 = vstv %s112_s26  ;;  %v52_v31 = vadd.f32 %v51_v27, %v50_v24 }
  0x1b   :  { %v72_v18 = vmul.f32 %v71_v17, %v34_v0  ;;  %v73_v19 = vstv %s113_s27  ;;  %v64_v22 = vadd.f32 %v63_v14, %v61_v13 }
  0x1c   :  { %v74_v20 = vmul.f32 %v73_v19, %v36_v3  ;;  %v76_v21 = vstv %s114_s28 }
  0x1d   :  { %v77_v23 = vmul.f32 %v76_v21, %v38_v5  ;;  %v79_v28 = vstv %s115_s29  ;;  %v66_v30 = vadd.f32 %v65_v25, %v64_v22 }
  0x1e   :  { %v75_v26 = vadd.f32 %v74_v20, %v72_v18 }
  0x20   :  { %v78_v29 = vadd.f32 %v77_v23, %v75_v26 }
  0x22   :  { %v80_v32 = vadd.f32 %v79_v28, %v78_v29 }
  0x24   :  { %v84_v33 = vsel %vm83_vm0, %v80_v32, 0.0 }
  0x25   :  { %v85_v34 = vsel %vm82_vm1, %v66_v30, %v84_v33 }
  0x26   :  { %v86_v35 = vsel %vm81_vm2, %v52_v31, %v85_v34 }
  0x27   :  { %87 = vst [vmem:[#allocation7] sm:$0x1] %v86_v35 }
  0x28   :  { %98 = dma.vmem_to_hbm [thread:$0]  %s94_s3, 16, %s96_s6, [#allocation6]  }
  0x29   :  { %185 = dma.done.wait [#allocation6], 16  }
  0x2a   :  { %186 = vsyncadd [#allocation6], 4294967280 }
  0x2b   :  { %103 = vsyncpa [#allocation5], 1 }
  0x2c   :  { %104 = vsyncpa [#allocation6], 1 }

</bundles_post_ra>
